<compile_context>
chip_gen: v7x
topology: tpu7x:2x2x1
jax: 0.10.0
libtpu: 0.0.40
codegen_flags: <defaults>
</compile_context>

<pallas_src>
import functools

import jax
import jax.numpy as jnp
import numpy as np
from jax import lax
from jax.experimental import pallas as pl
from jax.experimental.pallas import tpu as pltpu


def _contrastive_loss_kernel(e1_ref, e2_ref, lab_ref, out_ref, acc_ref, *,
                             inv_temperature: float, margin: float,
                             batch_size: int, block_b: int,
                             tiles_per_core: int, d_chunk: int):
    c = pl.program_id(0)          # "parallel" axis -> TensorCore on v7x
    i = pl.program_id(1)          # "arbitrary" axis -> streaming batch tiles

    @pl.when(i == 0)
    def _init():
        acc_ref[...] = jnp.zeros_like(acc_ref)

    tb, D = e1_ref.shape

    # Walk the hidden dim in lane chunks, upcasting each chunk to f32 on the
    # fly, so we never materialize full-tile f32 copies of the embeddings.
    dot = jnp.zeros((tb, 1), jnp.float32)
    nx2 = jnp.zeros((tb, 1), jnp.float32)
    ny2 = jnp.zeros((tb, 1), jnp.float32)
    for off in range(0, D, d_chunk):              # static unrolled loop
        width = min(d_chunk, D - off)
        xc = e1_ref[:, pl.ds(off, width)].astype(jnp.float32)
        yc = e2_ref[:, pl.ds(off, width)].astype(jnp.float32)
        dot = dot + jnp.sum(xc * yc, axis=1, keepdims=True)
        nx2 = nx2 + jnp.sum(xc * xc, axis=1, keepdims=True)
        ny2 = ny2 + jnp.sum(yc * yc, axis=1, keepdims=True)

    # torch cosine_similarity (ATen): dot / sqrt(clamp_min(nx2*ny2, eps^2)),
    # eps = 1e-8.  rsqrt goes to the EUP (own VLIW slot); fold 1/temperature
    # into a single constant multiply.
    eps2 = jnp.float32(1e-16)
    sim = (dot
           * lax.rsqrt(jnp.maximum(nx2 * ny2, eps2))
           * jnp.float32(inv_temperature))

    lab = lab_ref[...].astype(jnp.float32)        # (tb, 1)
    one = jnp.float32(1.0)
    positive_loss = lab * (one - sim)
    negative_loss = (one - lab) * jnp.maximum(sim - jnp.float32(margin),
                                              jnp.float32(0.0))
    loss = positive_loss + negative_loss          # (tb, 1)

    # Mask padded rows: covers both the partial tail tile and any fully
    # out-of-range (clamped) tile assigned to the second core.
    tile_idx = c * tiles_per_core + i
    row = lax.broadcasted_iota(jnp.int32, loss.shape, 0)
    valid = (tile_idx * block_b + row) < batch_size
    acc_ref[...] += jnp.where(valid, loss, jnp.float32(0.0))   # VPU add

    @pl.when(i == pl.num_programs(1) - 1)
    def _finalize():
        # Single cross-sublane reduce per core; /B happens in the wrapper.
        out_ref[...] = jnp.sum(acc_ref[...], keepdims=True).reshape(
            out_ref.shape)


def contrastive_loss(embeddings_1, embeddings_2, labels,
                     temperature: float = 0.07, margin: float = 0.5,
                     vmem_budget_bytes: int = 32 << 20,
                     d_chunk: int = 512):
    """Pallas TPU implementation of ContrastiveLoss.forward (returns scalar)."""
    B, D = embeddings_1.shape
    labels_2d = jnp.asarray(labels).reshape(B, 1).astype(jnp.float32)

    # ---- batch-tile sizing from an explicit VMEM budget ---------------------
    itemsize = jnp.dtype(embeddings_1.dtype).itemsize
    d_chunk_eff = min(d_chunk, D)
    per_row_bytes = (4 * D * itemsize      # 2 embedding inputs x 2 pipeline bufs
                     + 2 * 128 * 4         # label block, lane-padded f32, x2 bufs
                     + 2 * d_chunk_eff * 4  # live f32 chunk temporaries (xc, yc)
                     + 64)                 # (tb,1) accumulators / partials
    max_rows = max(8, vmem_budget_bytes // per_row_bytes)

    # Round to the packed sublane tile of the input dtype (8 f32 / 16 bf16 / 32 i8).
    pack = max(8, 8 * (4 // max(1, itemsize)))
    if max_rows >= B:
        tb = B                                     # single tile: full dim is ok
    else:
        tb = max(pack, (max_rows // pack) * pack)
    num_tiles = pl.cdiv(B, tb)

    # Split the streaming loop across 2 TensorCores (v7x); on 1-TC chips the
    # parallel axis is just two serial passes over disjoint tiles.
    num_cores = 2 if num_tiles >= 2 else 1
    tiles_per_core = pl.cdiv(num_tiles, num_cores)

    def emb_index_map(c, i):
        # Clamp so the DMA never reads past the last tile; the kernel masks
        # those rows out via the (unclamped) global row index.
        t = jnp.minimum(c * tiles_per_core + i, num_tiles - 1)
        return (t, 0)

    kernel = functools.partial(
        _contrastive_loss_kernel,
        inv_temperature=1.0 / float(temperature),
        margin=float(margin),
        batch_size=B,
        block_b=tb,
        tiles_per_core=tiles_per_core,
        d_chunk=d_chunk,
    )

    partials = pl.pallas_call(
        kernel,
        out_shape=jax.ShapeDtypeStruct((num_cores, 1, 1), jnp.float32),
        grid_spec=pltpu.PrefetchScalarGridSpec(
            num_scalar_prefetch=0,
            grid=(num_cores, tiles_per_core),
            in_specs=[
                pl.BlockSpec((tb, D), emb_index_map),
                pl.BlockSpec((tb, D), emb_index_map),
                pl.BlockSpec((tb, 1), emb_index_map),
            ],
            # One resident partial-sum block per core, written once.
            out_specs=pl.BlockSpec((1, 1, 1), lambda c, i: (c, 0, 0)),
            scratch_shapes=[pltpu.VMEM((tb, 1), jnp.float32)],
        ),
        compiler_params=pltpu.CompilerParams(
            dimension_semantics=("parallel", "arbitrary"),
            vmem_limit_bytes=48 << 20,
        ),
    )(embeddings_1, embeddings_2, labels_2d)

    # Final tiny reduction + mean in plain JAX (sums the per-core partials).
    return jnp.sum(partials) / jnp.float32(B)


def _reference(e1, e2, labels, temperature=0.07, margin=0.5):
    e1 = e1.astype(jnp.float32)
    e2 = e2.astype(jnp.float32)
    labels = jnp.asarray(labels).reshape(-1).astype(jnp.float32)
    eps = 1e-8
    dot = jnp.sum(e1 * e2, axis=1)
    nx2 = jnp.sum(e1 * e1, axis=1)
    ny2 = jnp.sum(e2 * e2, axis=1)
    sim = dot / jnp.sqrt(jnp.maximum(nx2 * ny2, eps * eps))   # ATen semantics
    sim = sim / temperature
    pos = labels * (1.0 - sim)
    neg = (1.0 - labels) * jnp.maximum(sim - margin, 0.0)
    return jnp.mean(pos + neg)


if __name__ == "__main__":
    key = jax.random.PRNGKey(0)
    keys = jax.random.split(key, 9)

    # Test 1: small shapes implied by the module ([batch, hidden]), single tile.
    B, D = 8, 32
    e1 = jax.random.normal(keys[0], (B, D), dtype=jnp.float32)
    e2 = jax.random.normal(keys[1], (B, D), dtype=jnp.float32)
    lab = jax.random.bernoulli(keys[2], 0.5, (B,)).astype(jnp.float32)

    loss = jax.block_until_ready(contrastive_loss(e1, e2, lab))
    ref = _reference(e1, e2, lab)
    assert np.allclose(np.asarray(loss), np.asarray(ref),
                       rtol=1e-5, atol=1e-5), (loss, ref)

    # Test 2: force batch tiling + dual-core split + masked tail tile
    # (B=20 not divisible by tb=8; core 1 gets one real tile and one clamped
    #  fully-masked tile).
    B2, D2 = 20, 128
    e1b = jax.random.normal(keys[3], (B2, D2), dtype=jnp.float32)
    e2b = jax.random.normal(keys[4], (B2, D2), dtype=jnp.float32)
    labb = jax.random.bernoulli(keys[5], 0.5, (B2,)).astype(jnp.float32)

    loss2 = jax.block_until_ready(
        contrastive_loss(e1b, e2b, labb, vmem_budget_bytes=40_000))
    ref2 = _reference(e1b, e2b, labb)
    assert np.allclose(np.asarray(loss2), np.asarray(ref2),
                       rtol=1e-5, atol=1e-5), (loss2, ref2)

    # Test 3: bf16 inputs -> packed sublane tile (tb multiple of 16) and the
    # chunked hidden-dim path (D=640 -> one 512-lane chunk + 128-lane tail).
    B3, D3 = 48, 640
    e1c = jax.random.normal(keys[6], (B3, D3), dtype=jnp.float32).astype(jnp.bfloat16)
    e2c = jax.random.normal(keys[7], (B3, D3), dtype=jnp.float32).astype(jnp.bfloat16)
    labc = jax.random.bernoulli(keys[8], 0.5, (B3,)).astype(jnp.float32)

    loss3 = jax.block_until_ready(
        contrastive_loss(e1c, e2c, labc, vmem_budget_bytes=170_000))
    ref3 = _reference(e1c, e2c, labc)
    assert np.allclose(np.asarray(loss3), np.asarray(ref3),
                       rtol=1e-4, atol=1e-5), (loss3, ref3)

    print("KERNEL_OK")
</pallas_src>

<mosaic_0001>
module attributes {stable_mosaic.version = 11 : i64} {
  func.func @_contrastive_loss_kernel(%arg0: i32, %arg1: i32, %arg2: memref<8x32xf32, #tpu.memory_space<vmem>>, %arg3: memref<8x32xf32, #tpu.memory_space<vmem>>, %arg4: memref<8x1xf32, #tpu.memory_space<vmem>>, %arg5: memref<1x1x1xf32, #tpu.memory_space<vmem>>, %arg6: memref<8x1xf32, #tpu.memory_space<vmem>>) attributes {dimension_semantics = [#tpu.dimension_semantics<parallel>, #tpu.dimension_semantics<arbitrary>], iteration_bounds = array<i64: 1, 1>, scalar_prefetch = 0 : i64, scratch_operands = 1 : i64, tpu.core_type = #tpu.core_type<tc>, window_params = [{transform_indices = @transform_0, window_bounds = array<i64: 8, 32>}, {transform_indices = @transform_1, window_bounds = array<i64: 8, 32>}, {transform_indices = @transform_2, window_bounds = array<i64: 8, 1>}, {transform_indices = @transform_3, window_bounds = array<i64: 1, 1, 1>}]} {
    %c0_i32 = arith.constant 0 : i32
    %0 = arith.cmpi eq, %arg1, %c0_i32 : i32
    %1 = arith.extui %0 : i1 to i32
    %c0_i32_0 = arith.constant 0 : i32
    %2 = arith.cmpi ne, %1, %c0_i32_0 : i32
    scf.if %2 {
      %cst_25 = arith.constant 0.000000e+00 : f32
      %55 = vector.broadcast %cst_25 : f32 to vector<8x1xf32>
      %c0_26 = arith.constant 0 : index
      %c0_27 = arith.constant 0 : index
      %56 = vector.load %arg6[%c0_26, %c0_27] : memref<8x1xf32, #tpu.memory_space<vmem>>, vector<8x1xf32>
      tpu.vector_store %arg6[%c0_26, %c0_27], %55 {strides = array<i32>} : memref<8x1xf32, #tpu.memory_space<vmem>>, vector<8x1xf32>,
    } else {
    }
    %cst = arith.constant 0.000000e+00 : f32
    %3 = vector.broadcast %cst : f32 to vector<8x1xf32>
    %cst_1 = arith.constant 0.000000e+00 : f32
    %4 = vector.broadcast %cst_1 : f32 to vector<8x1xf32>
    %cst_2 = arith.constant 0.000000e+00 : f32
    %5 = vector.broadcast %cst_2 : f32 to vector<8x1xf32>
    %c0 = arith.constant 0 : index
    %c0_3 = arith.constant 0 : index
    %6 = vector.load %arg2[%c0, %c0_3] : memref<8x32xf32, #tpu.memory_space<vmem>>, vector<8x32xf32>
    %c0_4 = arith.constant 0 : index
    %c0_5 = arith.constant 0 : index
    %7 = vector.load %arg3[%c0_4, %c0_5] : memref<8x32xf32, #tpu.memory_space<vmem>>, vector<8x32xf32>
    %8 = arith.mulf %6, %7 : vector<8x32xf32>
    %cst_6 = arith.constant dense<0.000000e+00> : vector<8xf32>
    %9 = vector.multi_reduction <add>, %8, %cst_6 [1] : vector<8x32xf32> to vector<8xf32>
    %10 = vector.shape_cast %9 : vector<8xf32> to vector<8x1xf32>
    %11 = arith.addf %3, %10 : vector<8x1xf32>
    %12 = arith.mulf %6, %6 : vector<8x32xf32>
    %cst_7 = arith.constant dense<0.000000e+00> : vector<8xf32>
    %13 = vector.multi_reduction <add>, %12, %cst_7 [1] : vector<8x32xf32> to vector<8xf32>
    %14 = vector.shape_cast %13 : vector<8xf32> to vector<8x1xf32>
    %15 = arith.addf %4, %14 : vector<8x1xf32>
    %16 = arith.mulf %7, %7 : vector<8x32xf32>
    %cst_8 = arith.constant dense<0.000000e+00> : vector<8xf32>
    %17 = vector.multi_reduction <add>, %16, %cst_8 [1] : vector<8x32xf32> to vector<8xf32>
    %18 = vector.shape_cast %17 : vector<8xf32> to vector<8x1xf32>
    %19 = arith.addf %5, %18 : vector<8x1xf32>
    %20 = arith.mulf %15, %19 : vector<8x1xf32>
    %cst_9 = arith.constant 1.000000e-16 : f32
    %21 = vector.broadcast %cst_9 : f32 to vector<8x1xf32>
    %22 = arith.maximumf %20, %21 : vector<8x1xf32>
    %23 = math.rsqrt %22 : vector<8x1xf32>
    %24 = arith.mulf %11, %23 : vector<8x1xf32>
    %cst_10 = arith.constant 14.2857141 : f32
    %25 = vector.broadcast %cst_10 : f32 to vector<8x1xf32>
    %26 = arith.mulf %24, %25 : vector<8x1xf32>
    %c0_11 = arith.constant 0 : index
    %c0_12 = arith.constant 0 : index
    %27 = vector.load %arg4[%c0_11, %c0_12] : memref<8x1xf32, #tpu.memory_space<vmem>>, vector<8x1xf32>
    %cst_13 = arith.constant 1.000000e+00 : f32
    %28 = vector.broadcast %cst_13 : f32 to vector<8x1xf32>
    %29 = arith.subf %28, %26 : vector<8x1xf32>
    %30 = arith.mulf %27, %29 : vector<8x1xf32>
    %cst_14 = arith.constant 1.000000e+00 : f32
    %31 = vector.broadcast %cst_14 : f32 to vector<8x1xf32>
    %32 = arith.subf %31, %27 : vector<8x1xf32>
    %cst_15 = arith.constant 5.000000e-01 : f32
    %33 = vector.broadcast %cst_15 : f32 to vector<8x1xf32>
    %34 = arith.subf %26, %33 : vector<8x1xf32>
    %cst_16 = arith.constant 0.000000e+00 : f32
    %35 = vector.broadcast %cst_16 : f32 to vector<8x1xf32>
    %36 = arith.maximumf %34, %35 : vector<8x1xf32>
    %37 = arith.mulf %32, %36 : vector<8x1xf32>
    %38 = arith.addf %30, %37 : vector<8x1xf32>
    %c1_i32 = arith.constant 1 : i32
    %39 = arith.muli %arg0, %c1_i32 : i32
    %40 = arith.addi %39, %arg1 : i32
    %41 = tpu.iota {dimensions = array<i32: 0>} : vector<8x1xi32>
    %c8_i32 = arith.constant 8 : i32
    %42 = arith.muli %40, %c8_i32 : i32
    %43 = vector.broadcast %42 : i32 to vector<8x1xi32>
    %44 = arith.addi %43, %41 : vector<8x1xi32>
    %c8_i32_17 = arith.constant 8 : i32
    %45 = vector.broadcast %c8_i32_17 : i32 to vector<8x1xi32>
    %46 = arith.cmpi slt, %44, %45 : vector<8x1xi32>
    %c0_18 = arith.constant 0 : index
    %c0_19 = arith.constant 0 : index
    %47 = vector.load %arg6[%c0_18, %c0_19] : memref<8x1xf32, #tpu.memory_space<vmem>>, vector<8x1xf32>
    %cst_20 = arith.constant 0.000000e+00 : f32
    %48 = vector.broadcast %cst_20 : f32 to vector<8x1xf32>
    %49 = arith.select %46, %38, %48 : vector<8x1xi1>, vector<8x1xf32>
    %50 = arith.addf %47, %49 : vector<8x1xf32>
    %c0_21 = arith.constant 0 : index
    %c0_22 = arith.constant 0 : index
    %51 = vector.load %arg6[%c0_21, %c0_22] : memref<8x1xf32, #tpu.memory_space<vmem>>, vector<8x1xf32>
    tpu.vector_store %arg6[%c0_21, %c0_22], %50 {strides = array<i32>} : memref<8x1xf32, #tpu.memory_space<vmem>>, vector<8x1xf32>,
    %c0_i32_23 = arith.constant 0 : i32
    %52 = arith.cmpi eq, %arg1, %c0_i32_23 : i32
    %53 = arith.extui %52 : i1 to i32
    %c0_i32_24 = arith.constant 0 : i32
    %54 = arith.cmpi ne, %53, %c0_i32_24 : i32
    scf.if %54 {
      %c0_25 = arith.constant 0 : index
      %c0_26 = arith.constant 0 : index
      %55 = vector.load %arg6[%c0_25, %c0_26] : memref<8x1xf32, #tpu.memory_space<vmem>>, vector<8x1xf32>
      %56 = vector.shape_cast %55 : vector<8x1xf32> to vector<1x8x1xf32>
      %cst_27 = arith.constant dense<0.000000e+00> : vector<1xf32>
      %57 = vector.multi_reduction <add>, %56, %cst_27 [1, 2] : vector<1x8x1xf32> to vector<1xf32>
      %58 = vector.shape_cast %57 : vector<1xf32> to vector<1x1x1xf32>
      %59 = vector.extract %58[0, 0, 0] : f32 from vector<1x1x1xf32>
      %60 = vector.broadcast %59 : f32 to vector<1x1xf32>
      %61 = vector.shape_cast %60 : vector<1x1xf32> to vector<1x1x1xf32>
      %c0_28 = arith.constant 0 : index
      %c0_29 = arith.constant 0 : index
      %c0_30 = arith.constant 0 : index
      %62 = vector.load %arg5[%c0_28, %c0_29, %c0_30] : memref<1x1x1xf32, #tpu.memory_space<vmem>>, vector<1x1x1xf32>
      tpu.vector_store %arg5[%c0_28, %c0_29, %c0_30], %61 {strides = array<i32>} : memref<1x1x1xf32, #tpu.memory_space<vmem>>, vector<1x1x1xf32>,
    } else {
    }
    return
  }
  func.func @transform_0(%arg0: i32, %arg1: i32) -> (i32, i32) {
    %c1_i32 = arith.constant 1 : i32
    %0 = arith.muli %arg0, %c1_i32 : i32
    %1 = arith.addi %0, %arg1 : i32
    %c0_i32 = arith.constant 0 : i32
    %2 = arith.minsi %1, %c0_i32 : i32
    %c0_i32_0 = arith.constant 0 : i32
    %c0_i32_1 = arith.constant 0 : i32
    return %2, %c0_i32_0 : i32, i32
  }
  func.func @transform_1(%arg0: i32, %arg1: i32) -> (i32, i32) {
    %c1_i32 = arith.constant 1 : i32
    %0 = arith.muli %arg0, %c1_i32 : i32
    %1 = arith.addi %0, %arg1 : i32
    %c0_i32 = arith.constant 0 : i32
    %2 = arith.minsi %1, %c0_i32 : i32
    %c0_i32_0 = arith.constant 0 : i32
    %c0_i32_1 = arith.constant 0 : i32
    return %2, %c0_i32_0 : i32, i32
  }
  func.func @transform_2(%arg0: i32, %arg1: i32) -> (i32, i32) {
    %c1_i32 = arith.constant 1 : i32
    %0 = arith.muli %arg0, %c1_i32 : i32
    %1 = arith.addi %0, %arg1 : i32
    %c0_i32 = arith.constant 0 : i32
    %2 = arith.minsi %1, %c0_i32 : i32
    %c0_i32_0 = arith.constant 0 : i32
    %c0_i32_1 = arith.constant 0 : i32
    return %2, %c0_i32_0 : i32, i32
  }
  func.func @transform_3(%arg0: i32, %arg1: i32) -> (i32, i32, i32) {
    %c0_i32 = arith.constant 0 : i32
    %c0_i32_0 = arith.constant 0 : i32
    %c0_i32_1 = arith.constant 0 : i32
    return %arg0, %c0_i32, %c0_i32_0 : i32, i32, i32
  }
}

</mosaic_0001>

<bundles_post_ra>
// kernel: tpu_custom_call.1
= control target key start
LH: loop header
LB: loop body
LE: loop exit
PB: predicated region body
PF: predicated region fallthrough
CT: control target
= control target key end

     0   :  { %8 = vsyncpa [#allocation4], 0  ;;  %s296_s0 = inlined_call_operand.vmem [shape: f32[8,32], index: 0, kind: input, shape index: {}]   ;;  %s297_s1 = inlined_call_operand.hbm [shape: f32[8,32], index: 1, kind: input, shape index: {}]   ;;  %s298_s2 = inlined_call_operand.vmem [shape: f32[8,1], index: 2, kind: input, shape index: {}]   ;;  %s299_s3 = inlined_call_operand.hbm [shape: f32[1,1,1], index: 3, kind: output, shape index: {}]  }
   0x1   :  { %9 = vsyncpa [#allocation5], 0  ;;  %s240_s12 = smov [#allocation3]   ;;  %s192_s16 = scalar_lea.hbm %s297_s1, 128 }
   0x2   :  { %s33_s13 = sshll.u32 %s240_s12, 4  ;;  %p193_p0 = scmp.ne.s32.totalorder %s297_s1, %s192_s16  ;;  %s34_s13 = int_to_ptr.vmem [resolvable:$true] %s33_s13 }
   0x3   :  { %p196_p1 = scmp.lt.u32.totalorder %s192_s16, %s297_s1 }
   0x5   :  { %p198_p2 = pnand %p196_p1, %p193_p0 }
   0x7   :  { %201 = shalt.err (!%p198_p2)
}
   0x8   :  { %s202_s21 = scalar_lea.vmem %s34_s13, 128  ;;  %p207_p4 = scmp.lt.s32.totalorder %s34_s13, %s34_s13 }
   0x9   :  { %p203_p3 = scmp.ne.s32.totalorder %s34_s13, %s202_s21  ;;  %p208_p5 = scmp.lt.s32.totalorder %s202_s21, %s202_s21 }
   0xb   :  { %p209_p6 = por %p208_p5, %p207_p4 }
   0xd   :  { %p210_p7 = pnand %p209_p6, %p203_p3 }
   0xf   :  { %213 = shalt.err (!%p210_p7)
}
  0x10   :  { %36 = dma.hbm_to_vmem [thread:$0]  %s297_s1, 128, %s34_s13, [#allocation4]  }
  0x11   :  { %236 = dma.done.wait [#allocation4], 128  }
  0x12   :  { %237 = vsyncadd [#allocation4], 4294967168  ;;  %v95_v0 = vld [vmem:[%s296_s0] sm:$0xff]  ;;  %vm98_vm0 = vcmask 261120   ;;  %v96_v1 = vld [vmem:[#allocation3] sm:$0xff]  ;;  %vm93_vm1 = vcmask 7168  }
  0x13   :  { %v103_v2 = vmul.f32 %v95_v0, %v95_v0  ;;  %v108_v3 = vmul.f32 %v96_v1, %v96_v1  ;;  %v97_v4 = vmul.f32 %v96_v1, %v95_v0  ;;  %v241_v8 = vmov 0.0   ;;  %v118_v16 = vld [vmem:[%s298_s2] sm:$0xff]  ;;  %s242_s2 = smov [#allocation6]  }
  0x14   :  { %94 = vst.msk [vmem:[#allocation2] sm:$0xff] %vm93_vm1, %v241_v8  ;;  %v121_v18 = vsub.f32 1.0, %v118_v16  ;;  %s161_s26 = sshll.u32 %s242_s2, 4  ;;  %vm153_vm2 = vcmask 0   ;;  %s162_s26 = int_to_ptr.vmem [resolvable:$true] %s161_s26 }
  0x15   :  { %v104_v5 = vsel %vm98_vm0, %v103_v2, 0.0  ;;  %v99_v6 = vsel %vm98_vm0, %v97_v4, 0.0  ;;  %v109_v7 = vsel %vm98_vm0, %v108_v3, 0.0  ;;  %s214_s28 = scalar_lea.vmem %s162_s26, 16  ;;  %s218_s29 = scalar_lea.vmem %s162_s26, 32 }
  0x16   :  { %105 = vadd.xlane.f32.xlu0 %v104_v5  ;;  %100 = vadd.xlane.f32.xlu1 %v99_v6  ;;  %p215_p8 = scmp.ne.s32.totalorder %s162_s26, %s214_s28  ;;  %p219_p9 = scmp.lt.s32.totalorder %s162_s26, %s162_s26 }
  0x17   :  { %p220_p10 = scmp.lt.s32.totalorder %s218_s29, %s214_s28 }
  0x19   :  { %p221_p11 = por %p220_p10, %p219_p9 }
  0x1a   :  { %110 = vadd.xlane.f32.xlu0 %v109_v7 }
  0x1b   :  { %v133_v24 = vld [vmem:[#allocation2] sm:$0xff]  ;;  %p222_p12 = pnand %p221_p11, %p215_p8 }
  0xa3   :  { %v106_v9 = vpop.xlane.xlu0 %105  ;;  %v101_v13 = vpop.xlane.xlu1 %100 }
  0xa7   :  { %v111_v10 = vpop.xlane.xlu0 %110 }
  0xa8   :  { %v113_v11 = vmul.f32 %v111_v10, %v106_v9 }
  0xaa   :  { %v114_v12 = vmax.f32 %v113_v11, 1e-16 }
  0xac   :  { %190 = vrsqrt.f32 %v114_v12 }
  0xb6   :  { %v191_v14 = vpop.eup %190 }
  0xb7   :  { %v116_v15 = vmul.f32 %v191_v14, %v101_v13 }
  0xb9   :  { %v117_v17 = vmul.f32 14.285714, %v116_v15 }
  0xbb   :  { %v119_v19 = vsub.f32 1.0, %v117_v17  ;;  %v184_v20 = vadd.f32 -0.5, %v117_v17 }
  0xbd   :  { %v123_v21 = vmax.f32 %v184_v20, 0.0  ;;  %v120_v22 = vmul.f32 %v119_v19, %v118_v16 }
  0xbf   :  { %v124_v23 = vmul.f32 %v123_v21, %v121_v18 }
  0xc1   :  { %v125_v25 = vadd.f32 %v124_v23, %v120_v22 }
  0xc3   :  { %v135_v26 = vadd.f32 %v133_v24, %v125_v25 }
  0xc5   :  { %137 = vst.msk [vmem:[#allocation2] sm:$0xff] %vm93_vm1, %v135_v26 }
  0xcc   :  { %v141_v27 = vld [vmem:[#allocation2] sm:$0xff] }
  0xcd   :  { %v142_v28 = vsel %vm93_vm1, %v141_v27, 0.0 }
  0xce   :  { %143 = vadd.xlane.f32.xlu1 %v142_v28 }
 0x15b   :  { %v144_v29 = vpop.xlane.xlu1 %143 }
 0x15c   :  { %v145_v30 = vrot.slane %v144_v29, 4 }
 0x15e   :  { %v146_v31 = vadd.f32 %v145_v30, %v144_v29 }
 0x160   :  { %v147_v32 = vrot.slane %v146_v31, 2 }
 0x162   :  { %v148_v33 = vadd.f32 %v147_v32, %v146_v31 }
 0x164   :  { %v149_v34 = vrot.slane %v148_v33, 1 }
 0x166   :  { %v150_v35 = vadd.f32 %v149_v34, %v148_v33 }
 0x168   :  { %185 = vpush %v150_v35 }
 0x199   :  { %s186_s27 = spop %185 }
 0x19a   :  { %v152_v36 = vstv %s186_s27 }
 0x19b   :  { %154 = vst.msk [vmem:[#allocation6] sm:$0x1] %vm153_vm2, %v152_v36 }
 0x19c   :  { %225 = shalt.err (!%p222_p12)
}
 0x19d   :  { %s226_s5 = scalar_lea.hbm %s299_s3, 16 }
 0x19e   :  { %p227_p13 = scmp.ne.s32.totalorder %s299_s3, %s226_s5  ;;  %p230_p0 = scmp.lt.u32.totalorder %s226_s5, %s299_s3 }
 0x1a0   :  { %p232_p1 = pnand %p230_p0, %p227_p13 }
 0x1a2   :  { %235 = shalt.err (!%p232_p1)
}
 0x1a3   :  { %164 = dma.vmem_to_hbm [thread:$0]  %s162_s26, 16, %s299_s3, [#allocation5]  }
 0x1a4   :  { %238 = dma.done.wait [#allocation5], 16  }
 0x1a5   :  { %239 = vsyncadd [#allocation5], 4294967280 }
 0x1a6   :  { %168 = vsyncpa [#allocation4], 1 }
 0x1a7   :  { %169 = vsyncpa [#allocation5], 1 }

</bundles_post_ra>
